<compile_context>
chip_gen: v5e
topology: v5e:2x2
jax: 0.10.0
libtpu: 0.0.40
codegen_flags: <defaults>
</compile_context>

<pallas_src>
import functools

import jax
import jax.numpy as jnp
from jax.experimental import pallas as pl
from jax.experimental.pallas import tpu as pltpu


def _attention_mask_kernel(x_ref, o_ref, *, scale):
    # x_ref / o_ref: (TM, H*W) lane-dense tile resident in VMEM.
    x = x_ref[...]
    # Accumulate the per-row sum in f32 (robust for bf16/fp8 inputs, free for f32).
    row_sum = jnp.sum(x.astype(jnp.float32), axis=-1, keepdims=True)      # (TM, 1)
    # One reciprocal per row (EUP) with the static scale folded in, then a single
    # VPU multiply per element. approx=False keeps f32-exact parity with x / xsum;
    # flip to approx=True if softmax-level precision is acceptable.
    coef = pl.reciprocal(row_sum, approx=False) * scale                   # (TM, 1)
    o_ref[...] = (x.astype(jnp.float32) * coef).astype(o_ref.dtype)


def _pick_row_block(rows, cols, itemsize, target_bytes=4 * 1024 * 1024):
    """Largest row-block that satisfies the (8,128) tiling rule and keeps a single
    block around `target_bytes` (fits comfortably in v7x's smaller VMEM too)."""
    max_rows = max(1, target_bytes // max(1, cols * itemsize))
    if rows <= max_rows:
        return rows                       # second-to-last dim == full extent: always legal
    tm = (max_rows // 8) * 8
    while tm >= 8:
        if rows % tm == 0:                # multiple of 8 and divides rows evenly
            return tm
        tm -= 8
    return rows                           # fallback: one full-extent block (still legal)


def attention_mask(x):
    """Pallas implementation of AttentionMask.forward.

    x: (N, C, H, W) float array.
    returns x / sum(x, dims=(2,3), keepdim=True) * C * H * 0.5
    """
    n, c, h, w = x.shape
    rows, cols = n * c, h * w
    scale = float(c) * float(h) * 0.5      # Python float -> immediate in the kernel

    # Lane-dense layout: for NCHW this reshape is contiguous/free, and the per-(n,c)
    # reduction over (H, W) becomes a single last-axis reduction over H*W elements.
    x2d = x.reshape(rows, cols)

    tm = _pick_row_block(rows, cols, x.dtype.itemsize)
    grid = (rows // tm,)

    kernel = functools.partial(_attention_mask_kernel, scale=scale)

    out2d = pl.pallas_call(
        kernel,
        out_shape=jax.ShapeDtypeStruct((rows, cols), x.dtype),
        grid_spec=pltpu.PrefetchScalarGridSpec(
            num_scalar_prefetch=0,
            grid=grid,
            in_specs=[pl.BlockSpec((tm, cols), lambda i: (i, 0))],
            out_specs=pl.BlockSpec((tm, cols), lambda i: (i, 0)),
        ),
        compiler_params=pltpu.CompilerParams(
            dimension_semantics=("parallel",),
        ),
    )(x2d)

    return out2d.reshape(n, c, h, w)


def attention_mask_ref(x):
    """Pure-JAX reference matching the PyTorch module exactly."""
    xsum = jnp.sum(x, axis=2, keepdims=True)
    xsum = jnp.sum(xsum, axis=3, keepdims=True)
    _, c, h, _ = x.shape
    return x / xsum * c * h * 0.5


if __name__ == "__main__":
    key = jax.random.PRNGKey(0)
    # Small NCHW input consistent with the forward pass.
    N, C, H, W = 2, 4, 16, 16
    x = jax.random.uniform(key, (N, C, H, W), dtype=jnp.float32) + 0.5

    out = attention_mask(x)
    out = jax.block_until_ready(out)

    ref = attention_mask_ref(x)
    assert out.shape == (N, C, H, W)
    assert out.dtype == x.dtype
    assert jnp.allclose(out, ref, rtol=1e-5, atol=1e-5), "mismatch vs reference"

    print("KERNEL_OK")
</pallas_src>

<mosaic_0001>
module attributes {stable_mosaic.version = 11 : i64} {
  func.func @_attention_mask_kernel(%arg0: i32, %arg1: memref<8x256xf32, #tpu.memory_space<vmem>>, %arg2: memref<8x256xf32, #tpu.memory_space<vmem>>) attributes {dimension_semantics = [#tpu.dimension_semantics<parallel>], iteration_bounds = array<i64: 1>, scalar_prefetch = 0 : i64, scratch_operands = 0 : i64, tpu.core_type = #tpu.core_type<tc>, window_params = [{transform_indices = @transform_0, window_bounds = array<i64: 8, 256>}, {transform_indices = @transform_1, window_bounds = array<i64: 8, 256>}]} {
    %c0 = arith.constant 0 : index
    %c0_0 = arith.constant 0 : index
    %0 = vector.load %arg1[%c0, %c0_0] : memref<8x256xf32, #tpu.memory_space<vmem>>, vector<8x256xf32>
    %cst = arith.constant dense<0.000000e+00> : vector<8xf32>
    %1 = vector.multi_reduction <add>, %0, %cst [1] : vector<8x256xf32> to vector<8xf32>
    %2 = vector.shape_cast %1 : vector<8xf32> to vector<8x1xf32>
    %3 = tpu.reciprocal %2 : vector<8x1xf32> -> vector<8x1xf32>
    %cst_1 = arith.constant 3.200000e+01 : f32
    %4 = vector.broadcast %cst_1 : f32 to vector<8x1xf32>
    %5 = arith.mulf %3, %4 : vector<8x1xf32>
    %6 = vector.broadcast %5 : vector<8x1xf32> to vector<8x256xf32>
    %7 = arith.mulf %0, %6 : vector<8x256xf32>
    %c0_2 = arith.constant 0 : index
    %c0_3 = arith.constant 0 : index
    %8 = vector.load %arg2[%c0_2, %c0_3] : memref<8x256xf32, #tpu.memory_space<vmem>>, vector<8x256xf32>
    tpu.vector_store %arg2[%c0_2, %c0_3], %7 {strides = array<i32>} : memref<8x256xf32, #tpu.memory_space<vmem>>, vector<8x256xf32>,
    return
  }
  func.func @transform_0(%arg0: i32) -> (i32, i32) {
    %c0_i32 = arith.constant 0 : i32
    %c0_i32_0 = arith.constant 0 : i32
    return %arg0, %c0_i32 : i32, i32
  }
  func.func @transform_1(%arg0: i32) -> (i32, i32) {
    %c0_i32 = arith.constant 0 : i32
    %c0_i32_0 = arith.constant 0 : i32
    return %arg0, %c0_i32 : i32, i32
  }
}

</mosaic_0001>

<bundles_post_ra>
// kernel: tpu_custom_call.1
= control target key start
LH: loop header
LB: loop body
LE: loop exit
PB: predicated region body
PF: predicated region fallthrough
CT: control target
= control target key end

     0   :  { %6 = vsyncpa [#allocation3], 0  ;;  %s138_s0 = inlined_call_operand.hbm [shape: f32[8,256], index: 0, kind: input, shape index: {}]   ;;  %s139_s1 = inlined_call_operand.hbm [shape: f32[8,256], index: 1, kind: output, shape index: {}]  }
   0x1   :  { %7 = vsyncpa [#allocation4], 0  ;;  %s13_s8 = sshll.u32 %s138_s0, 4  ;;  %s120_s9 = smov [#allocation2]   ;;  %s14_s8 = int_to_ptr.hbm [resolvable:$true] %s13_s8 }
   0x2   :  { %s15_s10 = sshll.u32 %s120_s9, 4  ;;  %s16_s10 = int_to_ptr.vmem [resolvable:$true] %s15_s10 }
   0x3   :  { %18 = dma.hbm_to_vmem [thread:$0]  %s14_s8, 256, %s16_s10, [#allocation3]  }
   0x4   :  { %116 = dma.done.wait [#allocation3], 256  }
   0x5   :  { %117 = vsyncadd [#allocation3], 4294967040  ;;  %v23_v0 = vld [vmem:[#allocation2] sm:$0xff]  ;;  %v24_v1 = vld [vmem:[#allocation2 + $0x8] sm:$0xff]  ;;  %s121_s0 = smov [#allocation5]   ;;  %s54_s14 = sshll.u32 %s139_s1, 4  ;;  %s55_s14 = int_to_ptr.hbm [resolvable:$true] %s54_s14 }
   0x6   :  { %v25_v2 = vadd.f32 %v24_v1, %v23_v0  ;;  %s52_s11 = sshll.u32 %s121_s0, 4  ;;  %s53_s11 = int_to_ptr.vmem [resolvable:$true] %s52_s11 }
   0x8   :  { %26 = vadd.xlane.f32.xlu0 %v25_v2 }
  0x7b   :  { %v27_v3 = vpop.xlane.xlu0 %26 }
  0x7c   :  { %66 = vrcp.f32 %v27_v3  ;;  %v39_v7 = vand.u32 2147483648, %v27_v3  ;;  %v37_v9 = vand.u32 2147483647, %v27_v3  ;;  %vm33_vm1 = vweird.f32 %v27_v3 }
  0x7e   :  { %v40_v11 = vor.u32 1.1754944e-38, %v39_v7  ;;  %vm38_vm3 = vcmp.eq.f32.partialorder %v37_v9, 8.507059e+37 }
  0x82   :  { %v67_v4 = vpop.eup %66 }
  0x83   :  { %v29_v5 = vmul.f32 %v67_v4, %v27_v3  ;;  %vm34_vm0 = vweird.f32 %v67_v4 }
  0x84   :  { %vm35_vm2 = vmor %vm33_vm1, %vm34_vm0 }
  0x85   :  { %v30_v6 = vsub.f32 1.0, %v29_v5 }
  0x87   :  { %v31_v8 = vmul.f32 %v67_v4, %v30_v6 }
  0x89   :  { %v32_v10 = vadd.f32 %v67_v4, %v31_v8 }
  0x8b   :  { %v36_v12 = vsel %vm35_vm2, %v67_v4, %v32_v10 }
  0x8c   :  { %v41_v13 = vsel %vm38_vm3, %v40_v11, %v36_v12 }
  0x8d   :  { %v42_v14 = vmul.f32 32.0, %v41_v13 }
  0x8f   :  { %v43_v15 = vmul.f32 %v42_v14, %v23_v0  ;;  %v44_v16 = vmul.f32 %v42_v14, %v24_v1 }
  0x91   :  { %45 = vst [vmem:[#allocation5] sm:$0xff] %v43_v15 }
  0x92   :  { %46 = vst [vmem:[#allocation5 + $0x8] sm:$0xff] %v44_v16 }
  0x93   :  { %57 = dma.vmem_to_hbm [thread:$0]  %s53_s11, 256, %s55_s14, [#allocation4]  }
  0x94   :  { %118 = dma.done.wait [#allocation4], 256  }
  0x95   :  { %119 = vsyncadd [#allocation4], 4294967040 }
  0x96   :  { %62 = vsyncpa [#allocation3], 1 }
  0x97   :  { %63 = vsyncpa [#allocation4], 1 }

</bundles_post_ra>
